<compile_context>
chip_gen: v5e
topology: v5e:2x2
jax: 0.10.0
libtpu: 0.0.40
codegen_flags: <defaults>
</compile_context>

<pallas_src>
import functools
import math

import jax
import jax.numpy as jnp
from jax.experimental import pallas as pl
from jax.experimental.pallas import tpu as pltpu

_LANE = 128
_SUBLANE = 8
_DEFAULT_TILE_N = 512          # rows per grid step (multiple of 8); fits VMEM on v5e/v6e/v7x
_NORM_EPS = 1e-12              # torch.nn.functional.normalize default eps


def _round_up(x, m):
    return ((x + m - 1) // m) * m


def _logit_head_kernel(x_ref, w_ref, b_ref, o_ref, *, scale, eps):
    # x_ref: [tile_n, D_pad]   w_ref: [D_pad, C_pad]   b_ref: [1, C_pad]
    x = x_ref[...].astype(jnp.float32)

    # F.normalize(x, dim=1): x / max(||x||_2, eps) == x * rsqrt(max(sum(x^2), eps^2))
    sq = jnp.sum(x * x, axis=-1, keepdims=True)
    xn = x * jax.lax.rsqrt(jnp.maximum(sq, eps * eps))

    # Linear head on the MXU, f32 accumulation, then bias + logit-scale epilogue.
    logits = jnp.dot(xn, w_ref[...], preferred_element_type=jnp.float32)
    logits = logits + b_ref[...]
    o_ref[...] = (logits * scale).astype(o_ref.dtype)


def prepare_logit_head_params(weight, bias=None, dtype=jnp.float32):
    """One-time parameter prep (do NOT call per forward).

    weight: [num_classes, in_features]  (PyTorch nn.Linear layout)
    bias:   [num_classes] or None
    Returns (w_padded [D_pad, C_pad], b_padded [1, C_pad], num_classes).
    """
    c, d = weight.shape
    d_pad = _round_up(d, _LANE)
    c_pad = _round_up(c, _LANE)
    w_t = jnp.transpose(weight).astype(dtype)                       # [D, C]
    w_t = jnp.pad(w_t, ((0, d_pad - d), (0, c_pad - c)))
    if bias is None:
        b = jnp.zeros((1, c_pad), dtype)
    else:
        b = jnp.pad(bias.astype(dtype).reshape(1, c), ((0, 0), (0, c_pad - c)))
    return w_t, b, c


def logit_head_forward(x, w_padded, b_padded, num_classes,
                       logit_scale=float(math.log(1.0 / 0.07)),
                       tile_n=_DEFAULT_TILE_N):
    """x: [N, in_features]. w_padded / b_padded from prepare_logit_head_params."""
    n, d = x.shape
    d_pad, c_pad = w_padded.shape
    assert d <= d_pad and num_classes <= c_pad

    # Fixed row tile (multiple of 8); shrink only when N itself is tiny.
    tile_n = max(_SUBLANE, min(_round_up(tile_n, _SUBLANE), _round_up(n, _SUBLANE)))
    n_pad = _round_up(n, tile_n)
    grid = (n_pad // tile_n,)
    # NOTE: on v7x keep grid[0] even where possible so the "parallel" axis
    # shards evenly across its 2 TensorCores.

    x_p = x
    if (n_pad != n) or (d_pad != d):
        x_p = jnp.pad(x, ((0, n_pad - n), (0, d_pad - d)))

    kernel = functools.partial(
        _logit_head_kernel, scale=float(math.exp(logit_scale)), eps=_NORM_EPS)

    cost = pl.CostEstimate(
        flops=2 * n_pad * d_pad * c_pad + 3 * n_pad * d_pad,
        transcendentals=n_pad,
        bytes_accessed=4 * (n_pad * d_pad + n_pad * c_pad + d_pad * c_pad + c_pad),
    )

    out_padded = pl.pallas_call(
        kernel,
        out_shape=jax.ShapeDtypeStruct((n_pad, c_pad), jnp.float32),
        grid_spec=pltpu.PrefetchScalarGridSpec(
            num_scalar_prefetch=0,
            grid=grid,
            in_specs=[
                pl.BlockSpec((tile_n, d_pad), lambda i: (i, 0)),   # x row tile
                pl.BlockSpec((d_pad, c_pad), lambda i: (0, 0)),    # W^T (whole, resident)
                pl.BlockSpec((1, c_pad), lambda i: (0, 0)),        # bias (whole)
            ],
            out_specs=pl.BlockSpec((tile_n, c_pad), lambda i: (i, 0)),
        ),
        compiler_params=pltpu.CompilerParams(
            dimension_semantics=("parallel",)),
        cost_estimate=cost,
    )(x_p, w_padded, b_padded)

    return out_padded[:n, :num_classes]


def logit_head_ref(x, weight, bias, logit_scale=float(math.log(1.0 / 0.07))):
    xf = x.astype(jnp.float32)
    norm = jnp.sqrt(jnp.sum(xf * xf, axis=1, keepdims=True))
    xn = xf / jnp.maximum(norm, _NORM_EPS)
    out = xn @ weight.astype(jnp.float32).T
    if bias is not None:
        out = out + bias.astype(jnp.float32)
    return out * math.exp(logit_scale)


if __name__ == "__main__":
    # Small shapes consistent with the module: batch=8, feature_dim=32, 10 classes.
    N, D, C = 8, 32, 10

    key = jax.random.PRNGKey(0)
    kx, kw, kb = jax.random.split(key, 3)
    x = jax.random.normal(kx, (N, D), dtype=jnp.float32)
    # head == nn.Linear(D, C): weights in PyTorch layout [out, in], plus bias.
    w = jax.random.normal(kw, (C, D), dtype=jnp.float32) * 0.1
    b = jax.random.normal(kb, (C,), dtype=jnp.float32) * 0.1

    w_pad, b_pad, n_cls = prepare_logit_head_params(w, b)   # one-time prep
    out = logit_head_forward(x, w_pad, b_pad, n_cls)
    out = jax.block_until_ready(out)

    ref = logit_head_ref(x, w, b)
    assert out.shape == (N, C)
    assert jnp.allclose(out, ref, atol=1e-4, rtol=1e-4), "mismatch vs reference"

    print("KERNEL_OK")
</pallas_src>

<mosaic_0001>
module attributes {stable_mosaic.version = 11 : i64} {
  func.func @_logit_head_kernel(%arg0: i32, %arg1: memref<8x128xf32, #tpu.memory_space<vmem>>, %arg2: memref<128x128xf32, #tpu.memory_space<vmem>>, %arg3: memref<1x128xf32, #tpu.memory_space<vmem>>, %arg4: memref<8x128xf32, #tpu.memory_space<vmem>>) attributes {dimension_semantics = [#tpu.dimension_semantics<parallel>], iteration_bounds = array<i64: 1>, scalar_prefetch = 0 : i64, scratch_operands = 0 : i64, tpu.core_type = #tpu.core_type<tc>, window_params = [{transform_indices = @transform_0, window_bounds = array<i64: 8, 128>}, {pipeline_mode = #tpu.pipeline_mode<synchronous>, transform_indices = @transform_1, window_bounds = array<i64: 128, 128>}, {pipeline_mode = #tpu.pipeline_mode<synchronous>, transform_indices = @transform_2, window_bounds = array<i64: 1, 128>}, {transform_indices = @transform_3, window_bounds = array<i64: 8, 128>}]} {
    %c0 = arith.constant 0 : index
    %c0_0 = arith.constant 0 : index
    %0 = vector.load %arg1[%c0, %c0_0] : memref<8x128xf32, #tpu.memory_space<vmem>>, vector<8x128xf32>
    %1 = arith.mulf %0, %0 : vector<8x128xf32>
    %cst = arith.constant dense<0.000000e+00> : vector<8xf32>
    %2 = vector.multi_reduction <add>, %1, %cst [1] : vector<8x128xf32> to vector<8xf32>
    %3 = vector.shape_cast %2 : vector<8xf32> to vector<8x1xf32>
    %cst_1 = arith.constant 1.000000e-24 : f32
    %4 = vector.broadcast %cst_1 : f32 to vector<8x1xf32>
    %5 = arith.maximumf %3, %4 : vector<8x1xf32>
    %6 = math.rsqrt %5 : vector<8x1xf32>
    %7 = vector.broadcast %6 : vector<8x1xf32> to vector<8x128xf32>
    %8 = arith.mulf %0, %7 : vector<8x128xf32>
    %c0_2 = arith.constant 0 : index
    %c0_3 = arith.constant 0 : index
    %9 = vector.load %arg2[%c0_2, %c0_3] : memref<128x128xf32, #tpu.memory_space<vmem>>, vector<128x128xf32>
    %cst_4 = arith.constant dense<0.000000e+00> : vector<8x128xf32>
    %10 = tpu.matmul %8, %9, %cst_4 {dimension_numbers = #tpu.dot_dimension_numbers<[1], [0], [0], [1], [0, 0, 1, 1], [], []>} : vector<8x128xf32>, vector<128x128xf32>, vector<8x128xf32> -> vector<8x128xf32>
    %c0_5 = arith.constant 0 : index
    %c0_6 = arith.constant 0 : index
    %11 = vector.load %arg3[%c0_5, %c0_6] : memref<1x128xf32, #tpu.memory_space<vmem>>, vector<1x128xf32>
    %12 = vector.broadcast %11 : vector<1x128xf32> to vector<8x128xf32>
    %13 = arith.addf %10, %12 : vector<8x128xf32>
    %cst_7 = arith.constant 14.2857141 : f32
    %14 = vector.broadcast %cst_7 : f32 to vector<8x128xf32>
    %15 = arith.mulf %13, %14 : vector<8x128xf32>
    %c0_8 = arith.constant 0 : index
    %c0_9 = arith.constant 0 : index
    %16 = vector.load %arg4[%c0_8, %c0_9] : memref<8x128xf32, #tpu.memory_space<vmem>>, vector<8x128xf32>
    tpu.vector_store %arg4[%c0_8, %c0_9], %15 {strides = array<i32>} : memref<8x128xf32, #tpu.memory_space<vmem>>, vector<8x128xf32>,
    return
  }
  func.func @transform_0(%arg0: i32) -> (i32, i32) {
    %c0_i32 = arith.constant 0 : i32
    %c0_i32_0 = arith.constant 0 : i32
    return %arg0, %c0_i32 : i32, i32
  }
  func.func @transform_1(%arg0: i32) -> (i32, i32) {
    %c0_i32 = arith.constant 0 : i32
    %c0_i32_0 = arith.constant 0 : i32
    %c0_i32_1 = arith.constant 0 : i32
    return %c0_i32, %c0_i32_0 : i32, i32
  }
  func.func @transform_2(%arg0: i32) -> (i32, i32) {
    %c0_i32 = arith.constant 0 : i32
    %c0_i32_0 = arith.constant 0 : i32
    %c0_i32_1 = arith.constant 0 : i32
    return %c0_i32, %c0_i32_0 : i32, i32
  }
  func.func @transform_3(%arg0: i32) -> (i32, i32) {
    %c0_i32 = arith.constant 0 : i32
    %c0_i32_0 = arith.constant 0 : i32
    return %arg0, %c0_i32 : i32, i32
  }
}

</mosaic_0001>

<bundles_post_ra>
// kernel: tpu_custom_call.1
= control target key start
LH: loop header
LB: loop body
LE: loop exit
PB: predicated region body
PF: predicated region fallthrough
CT: control target
= control target key end

     0   :  { %8 = vsyncpa [#allocation3], 0  ;;  %s244_s0 = inlined_call_operand.hbm [shape: f32[8,128], index: 0, kind: input, shape index: {}]   ;;  %s245_s1 = inlined_call_operand.hbm [shape: f32[128,128], index: 1, kind: input, shape index: {}]   ;;  %s246_s2 = inlined_call_operand.vmem [shape: f32[1,128], index: 2, kind: input, shape index: {}]   ;;  %s247_s3 = inlined_call_operand.hbm [shape: f32[8,128], index: 3, kind: output, shape index: {}]  }
   0x1   :  { %9 = vsyncpa [#allocation6], 0 }
   0x2   :  { %10 = vsyncpa [#allocation4], 0  ;;  %s16_s14 = sshll.u32 %s244_s0, 4  ;;  %s207_s15 = smov [#allocation2]   ;;  %s17_s14 = int_to_ptr.hbm [resolvable:$true] %s16_s14 }
   0x3   :  { %s18_s16 = sshll.u32 %s207_s15, 4  ;;  %s26_s19 = sshll.u32 %s245_s1, 4  ;;  %s19_s16 = int_to_ptr.vmem [resolvable:$true] %s18_s16  ;;  %s27_s19 = int_to_ptr.hbm [resolvable:$true] %s26_s19 }
   0x4   :  { %21 = dma.hbm_to_vmem [thread:$0]  %s17_s14, 128, %s19_s16, [#allocation3]  }
   0x5   :  { %s208_s20 = smov [#allocation5]   ;;  %s209_s22 = smov 128  }
   0x6   :  { %s28_s21 = sshll.u32 %s208_s20, 4  ;;  %s210_s23 = smov 8   ;;  %s29_s21 = int_to_ptr.vmem [resolvable:$true] %s28_s21 }
   0x7   :  { %34 = dma.hbm_to_vmem [thread:$0]  %s27_s19, 2048, %s29_s21, [#allocation6], %s209_s22, %s209_s22, %s210_s23  }
   0x8   :  { %201 = dma.done.wait [#allocation3], 128  }
   0x9   :  { %202 = vsyncadd [#allocation3], 4294967168 }
   0xa   :  { %203 = dma.done.wait [#allocation6], 2048  }
   0xb   :  { %204 = vsyncadd [#allocation6], 4294965248  ;;  %v45_v0 = vld [vmem:[#allocation2] sm:$0xff]  ;;  %v75_v2 = vld [vmem:[#allocation5 + $0x70] sm:$0xff]  ;;  %s211_s24 = smov [#allocation7]   ;;  %s110_s28 = sshll.u32 %s247_s3, 4  ;;  %s111_s28 = int_to_ptr.hbm [resolvable:$true] %s110_s28 }
   0xc   :  { %v76_v1 = vld [vmem:[#allocation5 + $0x78] sm:$0xff]  ;;  %v46_v3 = vmul.f32 %v45_v0, %v45_v0  ;;  %v74_v4 = vld [vmem:[#allocation5 + $0x68] sm:$0xff]  ;;  %v73_v5 = vld [vmem:[#allocation5 + $0x60] sm:$0xff]  ;;  %s108_s25 = sshll.u32 %s211_s24, 4  ;;  %s109_s25 = int_to_ptr.vmem [resolvable:$true] %s108_s25 }
   0xd   :  { %81 = vmatpush.msra.mxu0 %v76_v1  ;;  %v72_v6 = vld [vmem:[#allocation5 + $0x58] sm:$0xff]  ;;  %v71_v7 = vld [vmem:[#allocation5 + $0x50] sm:$0xff]  ;;  %v70_v8 = vld [vmem:[#allocation5 + $0x48] sm:$0xff] }
   0xe   :  { %47 = vadd.xlane.f32.xlu0 %v46_v3  ;;  %v69_v9 = vld [vmem:[#allocation5 + $0x40] sm:$0xff]  ;;  %v68_v10 = vld [vmem:[#allocation5 + $0x38] sm:$0xff]  ;;  %v67_v11 = vld [vmem:[#allocation5 + $0x30] sm:$0xff] }
   0xf   :  { %82 = vmatpush.msra.mxu0 %v75_v2  ;;  %v66_v12 = vld [vmem:[#allocation5 + $0x28] sm:$0xff]  ;;  %v65_v13 = vld [vmem:[#allocation5 + $0x20] sm:$0xff]  ;;  %v64_v14 = vld [vmem:[#allocation5 + $0x18] sm:$0xff] }
  0x10   :  { %v63_v15 = vld [vmem:[#allocation5 + $0x10] sm:$0xff]  ;;  %v62_v16 = vld [vmem:[#allocation5 + $0x8] sm:$0xff]  ;;  %v61_v17 = vld [vmem:[#allocation5] sm:$0xff] }
  0x11   :  { %83 = vmatpush.msra.mxu0 %v74_v4  ;;  %v126_v28 = vld [vmem:[%s246_s2] ss:$0 sm:$0xff] }
  0x13   :  { %84 = vmatpush.msra.mxu0 %v73_v5 }
  0x15   :  { %85 = vmatpush.msra.mxu0 %v72_v6 }
  0x17   :  { %86 = vmatpush.msra.mxu0 %v71_v7 }
  0x19   :  { %87 = vmatpush.msra.mxu0 %v70_v8 }
  0x1b   :  { %88 = vmatpush.msra.mxu0 %v69_v9 }
  0x1d   :  { %89 = vmatpush.msra.mxu0 %v68_v10 }
  0x1f   :  { %90 = vmatpush.msra.mxu0 %v67_v11 }
  0x21   :  { %91 = vmatpush.msra.mxu0 %v66_v12 }
  0x23   :  { %92 = vmatpush.msra.mxu0 %v65_v13 }
  0x25   :  { %93 = vmatpush.msra.mxu0 %v64_v14 }
  0x27   :  { %94 = vmatpush.msra.mxu0 %v63_v15 }
  0x29   :  { %95 = vmatpush.msra.mxu0 %v62_v16 }
  0x2b   :  { %96 = vmatpush.msra.mxu0 %v61_v17 }
  0x81   :  { %v48_v18 = vpop.xlane.xlu0 %47 }
  0x82   :  { %v49_v19 = vmax.f32 %v48_v18, 1e-24 }
  0x84   :  { %127 = vrsqrt.f32 %v49_v19  ;;  %vm56_vm1 = vweird.f32 %v49_v19 }
  0x8a   :  { %v128_v20 = vpop.eup %127 }
  0x8b   :  { %v51_v21 = vmul.f32 %v128_v20, %v49_v19  ;;  %vm57_vm0 = vweird.f32 %v128_v20 }
  0x8c   :  { %vm58_vm2 = vmor %vm56_vm1, %vm57_vm0 }
  0x8d   :  { %v52_v22 = vmul.f32 %v128_v20, %v51_v21 }
  0x8f   :  { %v53_v23 = vmul.f32 0.5, %v52_v22 }
  0x91   :  { %v54_v24 = vsub.f32 1.5, %v53_v23 }
  0x93   :  { %v55_v25 = vmul.f32 %v128_v20, %v54_v24 }
  0x95   :  { %v59_v26 = vsel %vm58_vm2, %v128_v20, %v55_v25 }
  0x96   :  { %v60_v27 = vmul.f32 %v59_v26, %v45_v0 }
  0x98   :  { %97 = vmatmul.f32.vlgmr.msra.gmra.mxu0 %v60_v27 }
 0x115   :  { %v98_v29 = vpop.f32.mrf.mxu0 }
 0x116   :  { %v99_v30 = vadd.f32 %v126_v28, %v98_v29 }
 0x118   :  { %v101_v31 = vmul.f32 14.285714, %v99_v30 }
 0x11a   :  { %102 = vst [vmem:[#allocation7] sm:$0xff] %v101_v31 }
 0x11b   :  { %113 = dma.vmem_to_hbm [thread:$0]  %s109_s25, 128, %s111_s28, [#allocation4]  }
 0x11c   :  { %205 = dma.done.wait [#allocation4], 128  }
 0x11d   :  { %206 = vsyncadd [#allocation4], 4294967168 }
 0x11e   :  { %118 = vsyncpa [#allocation3], 1 }
 0x11f   :  { %119 = vsyncpa [#allocation6], 1 }
 0x120   :  { %120 = vsyncpa [#allocation4], 1 }

</bundles_post_ra>
